<compile_context>
chip_gen: v5e
topology: v5e:2x2
jax: 0.10.0
libtpu: 0.0.40
codegen_flags: <defaults>
</compile_context>

<pallas_src>
import functools

import jax
import jax.numpy as jnp
from jax.experimental import pallas as pl
from jax.experimental.pallas import tpu as pltpu

LANES = 128
ACC_ROWS = 32      # (32, 128) f32 accumulator block -> 4 independent vreg add chains
CHUNK_ROWS = 1024  # per-chunk f32 intermediates: 1024*128*4 = 512 KiB


def _device_kind():
    try:
        return jax.devices()[0].device_kind.lower()
    except Exception:
        return ""


def _logmse_partial_kernel(x_ref, y_ref, o_ref, *, block_rows, chunk_rows,
                           blocks_per_shard, rows_total, full_blocks,
                           needs_mask):
    i = pl.program_id(1)

    @pl.when(i == 0)
    def _():
        o_ref[...] = jnp.zeros_like(o_ref)

    block_idx = pl.program_id(0) * blocks_per_shard + i
    n_chunks = block_rows // chunk_rows
    row0_block = block_idx * block_rows

    def accumulate(masked):
        # Chunked reduction: bounds the live f32 intermediates to ~0.5 MiB
        # independent of block size, and each chunk reduces through ACC_ROWS
        # independent sublane chains before one small accumulator update.
        def chunk_body(c, carry):
            r0 = pl.multiple_of(c * chunk_rows, chunk_rows)
            xc = x_ref[pl.ds(r0, chunk_rows), :].astype(jnp.float32)
            yc = y_ref[pl.ds(r0, chunk_rows), :].astype(jnp.float32)
            d = xc - yc
            dsq = d * d
            if masked:
                # Zero rows past the end of the row space (ragged last block
                # and shard-padding iterations that re-read a clamped block).
                local = jax.lax.broadcasted_iota(
                    jnp.int32, (chunk_rows, LANES), 0)
                dsq = jnp.where(row0_block + r0 + local < rows_total, dsq, 0.0)
            # (chunk_rows,128) -> (chunk_rows//32, 32, 128) -> VPU-only adds.
            o_ref[...] += dsq.reshape(-1, ACC_ROWS, LANES).sum(axis=0)
            return carry

        jax.lax.fori_loop(0, n_chunks, chunk_body, 0, unroll=True)

    if needs_mask:
        # Fast path for fully-populated interior blocks; masked path only for
        # the ragged / padding blocks.
        @pl.when(block_idx < full_blocks)
        def _():
            accumulate(masked=False)

        @pl.when(block_idx >= full_blocks)
        def _():
            accumulate(masked=True)
    else:
        accumulate(masked=False)


def log_mse(x, x_hat):
    """Pallas equivalent of torch.log10(nn.MSELoss()(x, x_hat)). Returns a scalar."""
    assert x.shape == x_hat.shape, "x and x_hat must have identical shapes"
    n = x.size
    assert n > 0

    xf = jnp.ravel(x)
    yf = jnp.ravel(x_hat)

    kind = _device_kind()
    is_v7 = "v7" in kind
    big_vmem = is_v7 or ("v6" in kind)
    # Bytes per input block (in the input dtype). 2 MiB fits v5e's 16 MiB
    # scoped-VMEM default with double-buffering; 4 MiB fits v6e/v7x's 32 MiB.
    target_block_bytes = (4 << 20) if big_vmem else (2 << 20)
    itemsize = int(jnp.dtype(x.dtype).itemsize)

    rows_main = n // LANES
    tail_sum = jnp.float32(0.0)

    if rows_main >= CHUNK_ROWS:
        # ---- Large path: big blocks, lane tail handled in the wrapper. ----
        block_rows = max(
            CHUNK_ROWS,
            (target_block_bytes // (LANES * itemsize)) // CHUNK_ROWS * CHUNK_ROWS)
        main_n = rows_main * LANES
        tail = n - main_n
        if tail:
            # <=127-element tail: tiny XLA reduction instead of padding/copying
            # the whole arrays. (The prefix slice below may still materialize a
            # copy when n % 128 != 0; unavoidable without element-granular
            # masking of a non-reshapeable 1-D buffer.)
            xt = jax.lax.slice(xf, (main_n,), (n,)).astype(jnp.float32)
            yt = jax.lax.slice(yf, (main_n,), (n,)).astype(jnp.float32)
            tail_sum = jnp.sum((xt - yt) * (xt - yt))
            xf = jax.lax.slice(xf, (0,), (main_n,))
            yf = jax.lax.slice(yf, (0,), (main_n,))
        rows = rows_main
        chunk_rows = CHUNK_ROWS
    else:
        # ---- Small path: single block; pad to a multiple of (ACC_ROWS, LANES).
        # Padded zeros contribute (0-0)^2 = 0 to the sum; copy cost negligible.
        pad = (-n) % (ACC_ROWS * LANES)
        if pad:
            xf = jnp.pad(xf, (0, pad))
            yf = jnp.pad(yf, (0, pad))
        rows = (n + pad) // LANES
        block_rows = rows
        chunk_rows = rows

    x2d = xf.reshape(rows, LANES)
    y2d = yf.reshape(rows, LANES)

    n_blocks = pl.cdiv(rows, block_rows)
    # v7x has 2 TensorCores per chip -> shard the row space across them with a
    # "parallel" leading axis. Single shard on v5e/v6e (1 TC) so block-aligned
    # inputs never pay for masking or a duplicated clamped-block read.
    # TODO(synk): on v7x, verify in xprof that "parallel" lands on both TCs;
    # switch to pltpu.CORE_PARALLEL / pl.core_map if it does not.
    num_shards = 2 if (is_v7 and n_blocks >= 2) else 1
    blocks_per_shard = pl.cdiv(n_blocks, num_shards)
    full_blocks = rows // block_rows           # fully-populated blocks
    needs_mask = (num_shards * blocks_per_shard) > full_blocks
    # Invariant: any row coverage beyond `rows` must be masked in-kernel.
    assert needs_mask or (num_shards * blocks_per_shard * block_rows == rows)
    last_block = n_blocks - 1

    def in_index(c, i):
        # Clamp so shard-padding iterations re-read the last valid block
        # (their contribution is fully masked in-kernel).
        return (jnp.minimum(c * blocks_per_shard + i, last_block), 0)

    kernel = functools.partial(
        _logmse_partial_kernel,
        block_rows=block_rows,
        chunk_rows=chunk_rows,
        blocks_per_shard=blocks_per_shard,
        rows_total=rows,
        full_blocks=full_blocks,
        needs_mask=needs_mask,
    )

    cost = pl.CostEstimate(
        flops=3 * n,
        transcendentals=0,
        bytes_accessed=2 * n * itemsize + num_shards * ACC_ROWS * LANES * 4,
    )

    partials = pl.pallas_call(
        kernel,
        out_shape=jax.ShapeDtypeStruct((num_shards * ACC_ROWS, LANES), jnp.float32),
        grid_spec=pltpu.PrefetchScalarGridSpec(
            num_scalar_prefetch=0,
            grid=(num_shards, blocks_per_shard),
            in_specs=[
                pl.BlockSpec((block_rows, LANES), in_index),
                pl.BlockSpec((block_rows, LANES), in_index),
            ],
            out_specs=pl.BlockSpec((ACC_ROWS, LANES), lambda c, i: (c, 0)),
        ),
        compiler_params=pltpu.CompilerParams(
            dimension_semantics=("parallel", "arbitrary"),
        ),
        cost_estimate=cost,
    )(x2d, y2d)

    # Final tiny reduce + tail + /n + log10 on the small partial-sum slab.
    mse = (jnp.sum(partials) + tail_sum) / jnp.float32(n)
    return jnp.log10(mse)


if __name__ == "__main__":
    key = jax.random.PRNGKey(0)
    k1, k2 = jax.random.split(key)

    # 1) Small NCHW f32 case (single-block path, no mask).
    x = jax.random.normal(k1, (2, 4, 16, 16), dtype=jnp.float32)
    x_hat = x + 0.1 * jax.random.normal(k2, (2, 4, 16, 16), dtype=jnp.float32)
    result = jax.block_until_ready(log_mse(x, x_hat))
    ref = jnp.log10(jnp.mean((x - x_hat) ** 2))
    assert jnp.allclose(result, ref, rtol=1e-5, atol=1e-6), (result, ref)

    # 2) Larger f32 case exercising the big-block path: full interior block
    #    (fast unmasked path) + ragged last block (masked path).
    k3, k4 = jax.random.split(k2)
    xb = jax.random.normal(k3, (4, 8, 160, 160), dtype=jnp.float32)
    xb_hat = xb + 0.05 * jax.random.normal(k4, (4, 8, 160, 160), dtype=jnp.float32)
    result_b = jax.block_until_ready(log_mse(xb, xb_hat))
    ref_b = jnp.log10(jnp.mean((xb - xb_hat) ** 2))
    assert jnp.allclose(result_b, ref_b, rtol=1e-4, atol=1e-5), (result_b, ref_b)

    # 3) bf16 inputs: no wrapper upcast; cast happens in-kernel.
    x16 = x.astype(jnp.bfloat16)
    x16_hat = x_hat.astype(jnp.bfloat16)
    result_16 = jax.block_until_ready(log_mse(x16, x16_hat))
    ref_16 = jnp.log10(jnp.mean(
        (x16.astype(jnp.float32) - x16_hat.astype(jnp.float32)) ** 2))
    assert jnp.allclose(result_16, ref_16, rtol=1e-4, atol=1e-5), (result_16, ref_16)

    # 4) Ragged large case (n % 128 != 0): wrapper-side lane tail + masked block.
    k5, k6 = jax.random.split(k4)
    xr = jax.random.normal(k5, (3, 7, 101, 223), dtype=jnp.float32)
    xr_hat = xr + 0.02 * jax.random.normal(k6, (3, 7, 101, 223), dtype=jnp.float32)
    result_r = jax.block_until_ready(log_mse(xr, xr_hat))
    ref_r = jnp.log10(jnp.mean((xr - xr_hat) ** 2))
    assert jnp.allclose(result_r, ref_r, rtol=1e-4, atol=1e-5), (result_r, ref_r)

    print("KERNEL_OK")
</pallas_src>

<mosaic_0001>
module attributes {stable_mosaic.version = 11 : i64} {
  func.func @_logmse_partial_kernel(%arg0: i32, %arg1: i32, %arg2: memref<32x128xf32, #tpu.memory_space<vmem>>, %arg3: memref<32x128xf32, #tpu.memory_space<vmem>>, %arg4: memref<32x128xf32, #tpu.memory_space<vmem>>) attributes {dimension_semantics = [#tpu.dimension_semantics<parallel>, #tpu.dimension_semantics<arbitrary>], iteration_bounds = array<i64: 1, 1>, scalar_prefetch = 0 : i64, scratch_operands = 0 : i64, tpu.core_type = #tpu.core_type<tc>, window_params = [{transform_indices = @transform_0, window_bounds = array<i64: 32, 128>}, {transform_indices = @transform_1, window_bounds = array<i64: 32, 128>}, {transform_indices = @transform_2, window_bounds = array<i64: 32, 128>}]} {
    %c0_i32 = arith.constant 0 : i32
    %0 = arith.cmpi eq, %arg1, %c0_i32 : i32
    %1 = arith.extui %0 : i1 to i32
    %c0_i32_0 = arith.constant 0 : i32
    %2 = arith.cmpi ne, %1, %c0_i32_0 : i32
    scf.if %2 {
      %cst_7 = arith.constant 0.000000e+00 : f32
      %16 = vector.broadcast %cst_7 : f32 to vector<32x128xf32>
      %c0_8 = arith.constant 0 : index
      %c0_9 = arith.constant 0 : index
      %17 = vector.load %arg4[%c0_8, %c0_9] : memref<32x128xf32, #tpu.memory_space<vmem>>, vector<32x128xf32>
      tpu.vector_store %arg4[%c0_8, %c0_9], %16 {strides = array<i32>} : memref<32x128xf32, #tpu.memory_space<vmem>>, vector<32x128xf32>,
    } else {
    }
    %c0_i32_1 = arith.constant 0 : i32
    %c32_i32 = arith.constant 32 : i32
    %3 = arith.muli %c0_i32_1, %c32_i32 : i32
    %4 = tpu.assume_multiple %3, 32 : i32
    %5 = arith.index_cast %4 : i32 to index
    %c0 = arith.constant 0 : index
    %6 = vector.load %arg2[%5, %c0] : memref<32x128xf32, #tpu.memory_space<vmem>>, vector<32x128xf32>
    %7 = arith.index_cast %4 : i32 to index
    %c0_2 = arith.constant 0 : index
    %8 = vector.load %arg3[%7, %c0_2] : memref<32x128xf32, #tpu.memory_space<vmem>>, vector<32x128xf32>
    %9 = arith.subf %6, %8 : vector<32x128xf32>
    %10 = arith.mulf %9, %9 : vector<32x128xf32>
    %c0_3 = arith.constant 0 : index
    %c0_4 = arith.constant 0 : index
    %11 = vector.load %arg4[%c0_3, %c0_4] : memref<32x128xf32, #tpu.memory_space<vmem>>, vector<32x128xf32>
    %12 = vector.shape_cast %10 : vector<32x128xf32> to vector<1x32x128xf32>
    %cst = arith.constant dense<0.000000e+00> : vector<32x128xf32>
    %13 = vector.multi_reduction <add>, %12, %cst [0] : vector<1x32x128xf32> to vector<32x128xf32>
    %14 = arith.addf %11, %13 : vector<32x128xf32>
    %c0_5 = arith.constant 0 : index
    %c0_6 = arith.constant 0 : index
    %15 = vector.load %arg4[%c0_5, %c0_6] : memref<32x128xf32, #tpu.memory_space<vmem>>, vector<32x128xf32>
    tpu.vector_store %arg4[%c0_5, %c0_6], %14 {strides = array<i32>} : memref<32x128xf32, #tpu.memory_space<vmem>>, vector<32x128xf32>,
    %c1_i32 = arith.constant 1 : i32
    return
  }
  func.func @transform_0(%arg0: i32, %arg1: i32) -> (i32, i32) {
    %c1_i32 = arith.constant 1 : i32
    %0 = arith.muli %arg0, %c1_i32 : i32
    %1 = arith.addi %0, %arg1 : i32
    %c0_i32 = arith.constant 0 : i32
    %2 = arith.minsi %1, %c0_i32 : i32
    %c0_i32_0 = arith.constant 0 : i32
    %c0_i32_1 = arith.constant 0 : i32
    return %2, %c0_i32_0 : i32, i32
  }
  func.func @transform_1(%arg0: i32, %arg1: i32) -> (i32, i32) {
    %c1_i32 = arith.constant 1 : i32
    %0 = arith.muli %arg0, %c1_i32 : i32
    %1 = arith.addi %0, %arg1 : i32
    %c0_i32 = arith.constant 0 : i32
    %2 = arith.minsi %1, %c0_i32 : i32
    %c0_i32_0 = arith.constant 0 : i32
    %c0_i32_1 = arith.constant 0 : i32
    return %2, %c0_i32_0 : i32, i32
  }
  func.func @transform_2(%arg0: i32, %arg1: i32) -> (i32, i32) {
    %c0_i32 = arith.constant 0 : i32
    %c0_i32_0 = arith.constant 0 : i32
    return %arg0, %c0_i32 : i32, i32
  }
}

</mosaic_0001>

<bundles_post_ra>
// kernel: tpu_custom_call.1
= control target key start
LH: loop header
LB: loop body
LE: loop exit
PB: predicated region body
PF: predicated region fallthrough
CT: control target
= control target key end

     0   :  { %7 = vsyncpa [#allocation3], 0  ;;  %s250_s0 = inlined_call_operand.hbm [shape: f32[32,128], index: 0, kind: input, shape index: {}]   ;;  %s251_s1 = inlined_call_operand.hbm [shape: f32[32,128], index: 1, kind: input, shape index: {}]   ;;  %s252_s2 = inlined_call_operand.hbm [shape: f32[32,128], index: 2, kind: output, shape index: {}]  }
   0x1   :  { %8 = vsyncpa [#allocation6], 0 }
   0x2   :  { %9 = vsyncpa [#allocation4], 0  ;;  %s20_s11 = sshll.u32 %s250_s0, 4  ;;  %s212_s12 = smov [#allocation2]   ;;  %s21_s11 = int_to_ptr.hbm [resolvable:$true] %s20_s11 }
   0x3   :  { %s22_s13 = sshll.u32 %s212_s12, 4  ;;  %s39_s16 = sshll.u32 %s251_s1, 4  ;;  %s23_s13 = int_to_ptr.vmem [resolvable:$true] %s22_s13  ;;  %s40_s16 = int_to_ptr.hbm [resolvable:$true] %s39_s16 }
   0x4   :  { %s213_s17 = smov 128   ;;  %s214_s18 = smov 8  }
   0x5   :  { %28 = dma.hbm_to_vmem [thread:$0]  %s21_s11, 512, %s23_s13, [#allocation3], %s213_s17, %s213_s17, %s214_s18  }
   0x6   :  { %s215_s19 = smov [#allocation5]  }
   0x7   :  { %s41_s20 = sshll.u32 %s215_s19, 4  ;;  %s42_s20 = int_to_ptr.vmem [resolvable:$true] %s41_s20 }
   0x8   :  { %47 = dma.hbm_to_vmem [thread:$0]  %s40_s16, 512, %s42_s20, [#allocation6], %s213_s17, %s213_s17, %s214_s18  }
   0x9   :  { %206 = dma.done.wait [#allocation3], 512  }
   0xa   :  { %207 = vsyncadd [#allocation3], 4294966784 }
   0xb   :  { %208 = dma.done.wait [#allocation6], 512  }
   0xc   :  { %209 = vsyncadd [#allocation6], 4294966784  ;;  %v72_v0 = vld [vmem:[#allocation2] sm:$0xff]  ;;  %v73_v2 = vld [vmem:[#allocation2 + $0x8] sm:$0xff]  ;;  %s216_s0 = smov [#allocation7]   ;;  %s110_s23 = sshll.u32 %s252_s2, 4  ;;  %s111_s23 = int_to_ptr.hbm [resolvable:$true] %s110_s23 }
   0xd   :  { %v76_v1 = vld [vmem:[#allocation5] sm:$0xff]  ;;  %v77_v4 = vld [vmem:[#allocation5 + $0x8] sm:$0xff]  ;;  %v74_v5 = vld [vmem:[#allocation2 + $0x10] sm:$0xff]  ;;  %s108_s1 = sshll.u32 %s216_s0, 4  ;;  %s109_s1 = int_to_ptr.vmem [resolvable:$true] %s108_s1 }
   0xe   :  { %v80_v3 = vsub.f32 %v72_v0, %v76_v1  ;;  %v78_v6 = vld [vmem:[#allocation5 + $0x10] sm:$0xff]  ;;  %v81_v7 = vsub.f32 %v73_v2, %v77_v4  ;;  %v75_v9 = vld [vmem:[#allocation2 + $0x18] sm:$0xff] }
   0xf   :  { %v82_v8 = vsub.f32 %v74_v5, %v78_v6  ;;  %v79_v10 = vld [vmem:[#allocation5 + $0x18] sm:$0xff] }
  0x10   :  { %v84_v11 = vmul.f32 %v80_v3, %v80_v3  ;;  %v83_v12 = vsub.f32 %v75_v9, %v79_v10  ;;  %v85_v13 = vmul.f32 %v81_v7, %v81_v7 }
  0x11   :  { %v86_v14 = vmul.f32 %v82_v8, %v82_v8 }
  0x12   :  { %v87_v15 = vmul.f32 %v83_v12, %v83_v12  ;;  %100 = vst [vmem:[#allocation7] sm:$0xff] %v84_v11 }
  0x13   :  { %101 = vst [vmem:[#allocation7 + $0x8] sm:$0xff] %v85_v13 }
  0x14   :  { %102 = vst [vmem:[#allocation7 + $0x10] sm:$0xff] %v86_v14 }
  0x15   :  { %103 = vst [vmem:[#allocation7 + $0x18] sm:$0xff] %v87_v15 }
  0x16   :  { %116 = dma.vmem_to_hbm [thread:$0]  %s109_s1, 512, %s111_s23, [#allocation4], %s213_s17, %s213_s17, %s214_s18  }
  0x17   :  { %210 = dma.done.wait [#allocation4], 512  }
  0x18   :  { %211 = vsyncadd [#allocation4], 4294966784 }
  0x19   :  { %121 = vsyncpa [#allocation3], 1 }
  0x1a   :  { %122 = vsyncpa [#allocation6], 1 }
  0x1b   :  { %123 = vsyncpa [#allocation4], 1 }

</bundles_post_ra>
